<compile_context>
chip_gen: v6e
topology: v6e:2x2x1
jax: 0.10.0
libtpu: 0.0.40
codegen_flags: <defaults>
</compile_context>

<pallas_src>
from functools import partial

import jax
import jax.numpy as jnp
from jax.experimental import pallas as pl
from jax.experimental.pallas import tpu as pltpu


# ---------------------------------------------------------------------------
# Modulation kernel: out = x * (scale_raw + 1) + shift      (the +1 is folded
# in here — the VPU add is free in this HBM-bound kernel).
# ---------------------------------------------------------------------------
def _modulate_kernel(x_ref, scale_ref, shift_ref, o_ref):
    o_ref[...] = (x_ref[...] * (scale_ref[...] + 1.0) + shift_ref[...]).astype(
        o_ref.dtype)


def modulate(x_flat, scale_raw, shift, *, tr_max=512, tl_max=1024):
    """x_flat: (rows, lanes).  scale_raw/shift: (rows, 1) or (rows, lanes)."""
    rows, lanes = x_flat.shape
    # Block shape must be a multiple of (8, 128) OR equal the full extent.
    tr = rows if rows <= tr_max else tr_max       # tr_max is a multiple of 8
    tl = lanes if lanes <= tl_max else tl_max     # tl_max is a multiple of 128
    grid = (pl.cdiv(rows, tr), pl.cdiv(lanes, tl))

    s_lanes = scale_raw.shape[1]                  # 1 (per-row) or lanes (expanded)
    if s_lanes == 1:
        s_tl = 1
        s_index = lambda i, j: (i, 0)             # only TR scalars per step
    else:
        s_tl = tl
        s_index = lambda i, j: (i, j)

    x_bytes = x_flat.dtype.itemsize
    s_bytes = scale_raw.dtype.itemsize
    cost = pl.CostEstimate(
        flops=2 * rows * lanes,
        transcendentals=0,
        bytes_accessed=2 * rows * lanes * x_bytes + 2 * rows * s_lanes * s_bytes,
    )

    return pl.pallas_call(
        _modulate_kernel,
        out_shape=jax.ShapeDtypeStruct((rows, lanes), x_flat.dtype),
        grid=grid,
        in_specs=[
            pl.BlockSpec((tr, tl), lambda i, j: (i, j)),
            pl.BlockSpec((tr, s_tl), s_index),
            pl.BlockSpec((tr, s_tl), s_index),
        ],
        out_specs=pl.BlockSpec((tr, tl), lambda i, j: (i, j)),
        compiler_params=pltpu.CompilerParams(
            dimension_semantics=("parallel", "parallel")),
        cost_estimate=cost,
    )(x_flat, scale_raw, shift)


# ---------------------------------------------------------------------------
# Full forward (one jit keeps the tiny FC / reshape glue fused on-device).
# ---------------------------------------------------------------------------
@partial(jax.jit, static_argnames=("channel",))
def affine_transform_forward(x, latent, w, b, channel):
    B, C, H, Wd = x.shape
    hw = H * Wd

    # Tiny FC: far below one MXU tile — let XLA do it inside the jit.
    style = jnp.dot(latent, w, preferred_element_type=jnp.float32) + b
    style = style.reshape(-1, 2, channel)            # matches .view(-1, 2, C, 1, 1)
    scale_raw = style[:, 0, :]                       # +1 folded into the kernel
    shift = style[:, 1, :]                           # (B_latent, C)

    if scale_raw.shape[0] != B:                      # latent-batch broadcasting
        scale_raw = jnp.broadcast_to(scale_raw, (B, C))
        shift = jnp.broadcast_to(shift, (B, C))

    if hw >= 128:
        # Lane-dense (B*C, H*W) slab, per-row scale/shift column.
        out = modulate(
            x.reshape(B * C, hw),
            scale_raw.reshape(B * C, 1),
            shift.reshape(B * C, 1),
        )
    else:
        # Small spatial maps: (B*C, H*W) would force masked partial stores.
        # Pack as (B, C*H*W) with scale/shift expanded per channel instead.
        scale_full = jnp.repeat(scale_raw, hw, axis=1)   # (B, C*H*W)
        shift_full = jnp.repeat(shift, hw, axis=1)
        out = modulate(x.reshape(B, C * hw), scale_full, shift_full)

    return out.reshape(B, C, H, Wd)


# ---------------------------------------------------------------------------
# Pure-JAX reference (mirrors the PyTorch forward).
# ---------------------------------------------------------------------------
def _reference_forward(x, latent, w, b, channel):
    style = latent @ w + b
    style = style.reshape(-1, 2, channel, 1, 1)
    scale = style[:, 0] + 1.0
    shift = style[:, 1]
    return x * scale + shift


if __name__ == "__main__":
    latent_dim = 32
    channel = 4
    B, H, W = 2, 16, 16

    key = jax.random.PRNGKey(0)
    kx, kl, kw, kb = jax.random.split(key, 4)
    x = jax.random.normal(kx, (B, channel, H, W), jnp.float32)
    latent = jax.random.normal(kl, (B, latent_dim), jnp.float32)
    # nn.Linear-style init; weight stored as (in, out).
    bound = 1.0 / jnp.sqrt(latent_dim)
    w = jax.random.uniform(kw, (latent_dim, 2 * channel), jnp.float32, -bound, bound)
    b = jax.random.uniform(kb, (2 * channel,), jnp.float32, -bound, bound)

    # Main path: H*W = 256 >= 128 -> (B*C, H*W) lane-dense packing.
    out = affine_transform_forward(x, latent, w, b, channel)
    out = jax.block_until_ready(out)
    ref = _reference_forward(x, latent, w, b, channel)
    assert out.shape == (B, channel, H, W)
    assert jnp.allclose(out, ref, atol=1e-3, rtol=1e-3), float(
        jnp.max(jnp.abs(out - ref)))

    # Small-spatial path: H*W = 16 < 128 -> (B, C*H*W) packing.
    x_small = jax.random.normal(kx, (B, channel, 4, 4), jnp.float32)
    out_s = affine_transform_forward(x_small, latent, w, b, channel)
    out_s = jax.block_until_ready(out_s)
    ref_s = _reference_forward(x_small, latent, w, b, channel)
    assert jnp.allclose(out_s, ref_s, atol=1e-3, rtol=1e-3), float(
        jnp.max(jnp.abs(out_s - ref_s)))

    print("KERNEL_OK")
</pallas_src>

<mosaic_0001>
module attributes {stable_mosaic.version = 11 : i64} {
  func.func @_modulate_kernel(%arg0: i32, %arg1: i32, %arg2: memref<8x256xf32, #tpu.memory_space<vmem>>, %arg3: memref<8x1xf32, #tpu.memory_space<vmem>>, %arg4: memref<8x1xf32, #tpu.memory_space<vmem>>, %arg5: memref<8x256xf32, #tpu.memory_space<vmem>>) attributes {dimension_semantics = [#tpu.dimension_semantics<parallel>, #tpu.dimension_semantics<parallel>], iteration_bounds = array<i64: 1, 1>, scalar_prefetch = 0 : i64, scratch_operands = 0 : i64, tpu.core_type = #tpu.core_type<tc>, window_params = [{transform_indices = @transform_0, window_bounds = array<i64: 8, 256>}, {transform_indices = @transform_1, window_bounds = array<i64: 8, 1>}, {transform_indices = @transform_2, window_bounds = array<i64: 8, 1>}, {transform_indices = @transform_3, window_bounds = array<i64: 8, 256>}]} {
    %c0 = arith.constant 0 : index
    %c0_0 = arith.constant 0 : index
    %0 = vector.load %arg2[%c0, %c0_0] : memref<8x256xf32, #tpu.memory_space<vmem>>, vector<8x256xf32>
    %c0_1 = arith.constant 0 : index
    %c0_2 = arith.constant 0 : index
    %1 = vector.load %arg3[%c0_1, %c0_2] : memref<8x1xf32, #tpu.memory_space<vmem>>, vector<8x1xf32>
    %cst = arith.constant 1.000000e+00 : f32
    %2 = vector.broadcast %cst : f32 to vector<8x1xf32>
    %3 = arith.addf %1, %2 : vector<8x1xf32>
    %4 = vector.broadcast %3 : vector<8x1xf32> to vector<8x256xf32>
    %5 = arith.mulf %0, %4 : vector<8x256xf32>
    %c0_3 = arith.constant 0 : index
    %c0_4 = arith.constant 0 : index
    %6 = vector.load %arg4[%c0_3, %c0_4] : memref<8x1xf32, #tpu.memory_space<vmem>>, vector<8x1xf32>
    %7 = vector.broadcast %6 : vector<8x1xf32> to vector<8x256xf32>
    %8 = arith.addf %5, %7 : vector<8x256xf32>
    %c0_5 = arith.constant 0 : index
    %c0_6 = arith.constant 0 : index
    %9 = vector.load %arg5[%c0_5, %c0_6] : memref<8x256xf32, #tpu.memory_space<vmem>>, vector<8x256xf32>
    tpu.vector_store %arg5[%c0_5, %c0_6], %8 {strides = array<i32>} : memref<8x256xf32, #tpu.memory_space<vmem>>, vector<8x256xf32>,
    return
  }
  func.func @transform_0(%arg0: i32, %arg1: i32) -> (i32, i32) {
    %c0_i32 = arith.constant 0 : i32
    return %arg0, %arg1 : i32, i32
  }
  func.func @transform_1(%arg0: i32, %arg1: i32) -> (i32, i32) {
    %c0_i32 = arith.constant 0 : i32
    %c0_i32_0 = arith.constant 0 : i32
    return %arg0, %c0_i32 : i32, i32
  }
  func.func @transform_2(%arg0: i32, %arg1: i32) -> (i32, i32) {
    %c0_i32 = arith.constant 0 : i32
    %c0_i32_0 = arith.constant 0 : i32
    return %arg0, %c0_i32 : i32, i32
  }
  func.func @transform_3(%arg0: i32, %arg1: i32) -> (i32, i32) {
    %c0_i32 = arith.constant 0 : i32
    return %arg0, %arg1 : i32, i32
  }
}

</mosaic_0001>

<bundles_post_ra>
// kernel: squeeze.1
= control target key start
LH: loop header
LB: loop body
LE: loop exit
PB: predicated region body
PF: predicated region fallthrough
CT: control target
= control target key end

     0   :  { %s35_s8 = smov 125   ;;  %vm8_vm0 = vcmask 7168   ;;  %s36_s11 = smov 126   ;;  %s62_s0 = inlined_call_operand.vmem [shape: f32[2,4], index: 0, kind: input, shape index: {}]   ;;  %s63_s1 = inlined_call_operand.vmem [shape: f32[8,1], index: 1, kind: output, shape index: {}]  }
   0x1   :  { %v5_v0 = vld [vmem:[%s62_s0] sm:$0x3]  ;;  %s34_s0 = smov 127  }
   0x2   :  { %6 = vst [vmem:[#allocation0] sm:$0x3] %v5_v0 }
   0x9   :  { %v10_v1 = vld [vmem:[#allocation0] sm:$0x3]  }
   0xa   :  { %v22_v2 = vld [vmem:[#allocation0] sm:$0x3]   ;;  %11 = vrot.lane.b32.xlu0 %v10_v1, %s34_s0 }
   0xb   :  { %23 = vrot.lane.b32.xlu1 %v22_v2, %s35_s8  ;;  %v7_v3 = vld [vmem:[#allocation0] sm:$0x3]  }
   0xc   :  { %v16_v4 = vld [vmem:[#allocation0] sm:$0x3]   ;;  %9 = vst.msk [vmem:[%s63_s1] ss:$4 sm:$0x3] %vm8_vm0, %v7_v3  }
   0xe   :  { %17 = vrot.lane.b32.xlu0 %v16_v4, %s36_s11 }
  0x7c   :  { %v12_v5 = vpop.permute.xlu0 %11  }
  0x7d   :  { %v24_v6 = vpop.permute.xlu1 %23   ;;  %28 = vst.msk [vmem:[%s63_s1 + $0x1] ss:$4 sm:$0x3] %vm8_vm0, %v12_v5  }
  0x7e   :  { %30 = vst.msk [vmem:[%s63_s1 + $0x3] ss:$4 sm:$0x3] %vm8_vm0, %v24_v6  }
  0x80   :  { %v18_v7 = vpop.permute.xlu0 %17  }
  0x81   :  { %29 = vst.msk [vmem:[%s63_s1 + $0x2] ss:$4 sm:$0x3] %vm8_vm0, %v18_v7  }

// kernel: affine_transform_forward.1
= control target key start
LH: loop header
LB: loop body
LE: loop exit
PB: predicated region body
PF: predicated region fallthrough
CT: control target
= control target key end

     0   :  { %v41_v0 = vmov 0   ;;  %s80_s1 = inlined_call_operand.vmem [shape: f32[8,1], index: 1, kind: input, shape index: {}]   ;;  %s81_s2 = inlined_call_operand.vmem [shape: f32[8,1], index: 2, kind: input, shape index: {}]   ;;  %s82_s0 = inlined_call_operand.vmem [shape: f32[8,256], index: 0, kind: input, shape index: {}]   ;;  %s83_s3 = inlined_call_operand.vmem [shape: f32[8,256], index: 3, kind: output, shape index: {}]  }
   0x1   :  { %40 = vset.pattern.permute.xlu0 %v41_v0  ;;  %v16_v1 = vld [vmem:[%s80_s1] sm:$0xff]  ;;  %v15_v6 = vld [vmem:[%s82_s0 + $0x8] sm:$0xff] }
   0x2   :  { %v17_v2 = vadd.f32 1.0, %v16_v1  ;;  %v25_v3 = vld [vmem:[%s81_s2] sm:$0xff] }
   0x3   :  { %v14_v5 = vld [vmem:[%s82_s0] sm:$0xff] }
   0x4   :  { %20 = vperm.xlu0 %40, %v17_v2  }
   0x8   :  { %28 = vperm.xlu0 %40, %v25_v3  }
  0x7f   :  { %v21_v4 = vpop.permute.xlu0 %20 }
  0x80   :  { %v23_v7 = vmul.f32 %v21_v4, %v14_v5  ;;  %v24_v8 = vmul.f32 %v21_v4, %v15_v6 }
  0x83   :  { %v29_v9 = vpop.permute.xlu0 %28 }
  0x84   :  { %v31_v10 = vadd.f32 %v29_v9, %v23_v7  ;;  %v32_v11 = vadd.f32 %v29_v9, %v24_v8 }
  0x86   :  { %33 = vst [vmem:[%s83_s3] sm:$0xff] %v31_v10  ;;  %34 = vst [vmem:[%s83_s3 + $0x8] sm:$0xff] %v32_v11 }

</bundles_post_ra>
